<compile_context>
chip_gen: v6e
topology: v6e:2x2x1
jax: 0.10.0
libtpu: 0.0.40
codegen_flags: <defaults>
</compile_context>

<pallas_src>
import math

import jax
import jax.numpy as jnp
from jax.experimental import pallas as pl
from jax.experimental.pallas import tpu as pltpu


def _flash_attention_head_kernel(xq_ref, xkv_ref, wq_ref, bq_ref, wkv_ref,
                                 bkv_ref, o_ref, q_sc, m_sc, l_sc, acc_sc):
    # xq_ref : (Bt, tq,  E)   rows of x feeding this q tile
    # xkv_ref: (Bt, tkv, E)   rows of x feeding this kv tile
    # wq_ref : (E, Hp) bf16   q weights, 1/sqrt(H) pre-folded, zero-padded
    # bq_ref : (1, Hp) f32
    # wkv_ref: (E, 2*Hp) bf16 [k | v] weights, zero-padded
    # bkv_ref: (1, 2*Hp) f32
    # o_ref  : (Bt, tq, Hp)   lane-dense padded output
    qi = pl.program_id(1)
    ki = pl.program_id(2)
    n_kv = pl.num_programs(2)

    Bt, tq, _ = xq_ref.shape
    tkv = xkv_ref.shape[1]
    Hp = o_ref.shape[-1]

    q_start = qi * tq
    kv_start = ki * tkv

    @pl.when(ki == 0)
    def _init():
        # Project q once per (batch tile, q tile); scale is folded into wq/bq.
        xq = xq_ref[...].astype(jnp.bfloat16)
        q = jax.lax.dot_general(
            xq, wq_ref[...],
            dimension_numbers=(((2,), (0,)), ((), ())),
            preferred_element_type=jnp.float32)
        q_sc[...] = (q + bq_ref[...]).astype(jnp.bfloat16)
        m_sc[...] = jnp.full_like(m_sc, -jnp.inf)
        l_sc[...] = jnp.zeros_like(l_sc)
        acc_sc[...] = jnp.zeros_like(acc_sc)

    # Causal block skip: this kv tile contributes only if its first column is
    # not strictly in the future of every row of the q tile.
    @pl.when(kv_start <= q_start + (tq - 1))
    def _update():
        # k/v projection for this kv tile: one fused bf16 matmul (N = 2*Hp).
        xkv = xkv_ref[...].astype(jnp.bfloat16)
        kv = jax.lax.dot_general(
            xkv, wkv_ref[...],
            dimension_numbers=(((2,), (0,)), ((), ())),
            preferred_element_type=jnp.float32)
        kv = kv + bkv_ref[...]                              # (Bt, tkv, 2*Hp)
        k = kv[:, :, 0:Hp].astype(jnp.bfloat16)             # 128-aligned slice
        v = kv[:, :, Hp:2 * Hp].astype(jnp.bfloat16)        # 128-aligned slice

        # scores[b, i, j] = q[b, i, :] . k[b, j, :]  (no explicit transpose)
        s = jax.lax.dot_general(
            q_sc[...], k,
            dimension_numbers=(((2,), (2,)), ((0,), (0,))),
            preferred_element_type=jnp.float32)             # (Bt, tq, tkv)

        rows = q_start + jax.lax.broadcasted_iota(jnp.int32, (tq, tkv), 0)
        cols = kv_start + jax.lax.broadcasted_iota(jnp.int32, (tq, tkv), 1)
        s = jnp.where((cols <= rows)[None, :, :], s, -1e30)

        # Online softmax update (f32), normalization deferred to the end.
        m_prev = m_sc[...]
        m_new = jnp.maximum(m_prev, jnp.max(s, axis=-1, keepdims=True))
        alpha = jnp.exp(m_prev - m_new)
        p = jnp.exp(s - m_new)
        l_sc[...] = alpha * l_sc[...] + jnp.sum(p, axis=-1, keepdims=True)
        pv = jax.lax.dot_general(
            p.astype(jnp.bfloat16), v,
            dimension_numbers=(((2,), (1,)), ((0,), (0,))),
            preferred_element_type=jnp.float32)             # (Bt, tq, Hp)
        acc_sc[...] = alpha * acc_sc[...] + pv
        m_sc[...] = m_new

    @pl.when(ki == n_kv - 1)
    def _finalize():
        # Deferred normalization: O(S*Hp) multiplies instead of O(S*S).
        inv_l = pl.reciprocal(l_sc[...], approx=True)
        o_ref[...] = (acc_sc[...] * inv_l).astype(o_ref.dtype)


def _round_up(n, m):
    return ((n + m - 1) // m) * m


def _pick_seq_tile(S, cap=256):
    """Largest sequence tile <= cap that divides S and is sublane-friendly."""
    if S <= cap:
        return S
    for t in range(cap, 0, -1):
        if S % t == 0 and t % 8 == 0:
            return t
    return S  # full-extent block is always layout-legal


def attention_head_forward(x, wq, bq, wk, bk, wv, bv, *,
                           tq=None, tkv=None, btile=None):
    """Single causal attention head.

    x : [B, S, E]
    wq, wk, wv : [H, E]   (PyTorch nn.Linear layout)
    bq, bk, bv : [H]
    returns [B, S, H]
    """
    B, S, E = x.shape
    H = wq.shape[0]
    Hp = _round_up(H, 128)                     # lane-dense padded head dim

    # ---- wrapper-side weight prep (one-time, outside the kernel) ----------
    # Fold 1/sqrt(H) into the q projection; zero-pad head dim to Hp so the
    # padded columns contribute nothing to scores or output.
    scale = jnp.float32(H) ** jnp.float32(-0.5)
    wq_p = jnp.zeros((E, Hp), jnp.float32).at[:, :H].set(wq.T * scale)
    bq_p = jnp.zeros((1, Hp), jnp.float32).at[0, :H].set(bq * scale)
    wkv_p = (jnp.zeros((E, 2 * Hp), jnp.float32)
             .at[:, 0:H].set(wk.T)
             .at[:, Hp:Hp + H].set(wv.T))
    bkv_p = (jnp.zeros((1, 2 * Hp), jnp.float32)
             .at[0, 0:H].set(bk)
             .at[0, Hp:Hp + H].set(bv))
    wq_p = wq_p.astype(jnp.bfloat16)
    wkv_p = wkv_p.astype(jnp.bfloat16)

    # ---- tiling: sequence tiles + VMEM-budgeted batch tile ----------------
    if tq is None:
        tq = _pick_seq_tile(S)
    if tkv is None:
        tkv = tq
    assert S % tq == 0 and S % tkv == 0

    try:
        vmem_cap = int(pltpu.get_tpu_info().vmem_capacity_bytes)
    except Exception:
        vmem_cap = 64 << 20                    # conservative: v7x per-TC VMEM

    itemsize = jnp.dtype(x.dtype).itemsize

    def _vmem_estimate(bt):
        xq_blk = bt * tq * E * itemsize
        xkv_blk = bt * tkv * E * itemsize
        out_blk = bt * tq * Hp * itemsize
        weights = E * Hp * 2 + E * 2 * Hp * 2 + Hp * 4 + 2 * Hp * 4
        scratch = bt * tq * Hp * (2 + 4) + 2 * bt * tq * 4      # q, acc, m, l
        temps = (bt * tkv * 2 * Hp * (4 + 2)                    # kv proj + k,v
                 + 3 * bt * tq * tkv * 4                        # scores/p f32
                 + bt * tq * tkv * 2)                           # p bf16
        # x2 for double-buffered pipelining of the streamed blocks.
        return 2 * (xq_blk + xkv_blk + out_blk + weights) + scratch + temps

    n_seq_steps = (S // tq) * (S // tkv)
    if btile is None:
        budget = vmem_cap // 3                 # review: <= ~1/3 of scoped VMEM
        divisors = [d for d in range(1, B + 1) if B % d == 0]
        fitting = [d for d in divisors if _vmem_estimate(d) <= budget] or [1]
        # Target >= 8 total grid steps (>= 4 per v7x TensorCore) when possible.
        target_steps = min(8, (B // min(fitting)) * n_seq_steps)
        ok = [d for d in fitting if (B // d) * n_seq_steps >= target_steps]
        btile = max(ok) if ok else min(fitting)
    assert B % btile == 0

    est = _vmem_estimate(btile)
    vmem_limit = int(min(int(0.75 * vmem_cap),          # <=48 MiB on v7x,
                         max(32 << 20,                  # <=96 MiB on v5e/v6e
                             2 * est,
                             est + (4 << 20))))

    grid = (B // btile, S // tq, S // tkv)

    grid_spec = pltpu.PrefetchScalarGridSpec(
        num_scalar_prefetch=0,
        grid=grid,
        in_specs=[
            # x feeding the q rows of this tile.
            # (If the x-block DMA is still exposed in a profile, sweep
            #  pipeline_mode=pl.Buffered(3) here on v5e/v6e.)
            pl.BlockSpec((btile, tq, E), lambda b, qi, ki: (b, qi, 0)),
            # x feeding the k/v rows of this tile.
            pl.BlockSpec((btile, tkv, E), lambda b, qi, ki: (b, ki, 0)),
            pl.BlockSpec((E, Hp), lambda b, qi, ki: (0, 0)),        # wq (scaled)
            pl.BlockSpec((1, Hp), lambda b, qi, ki: (0, 0)),        # bq
            pl.BlockSpec((E, 2 * Hp), lambda b, qi, ki: (0, 0)),    # [wk|wv]
            pl.BlockSpec((1, 2 * Hp), lambda b, qi, ki: (0, 0)),    # [bk|bv]
        ],
        out_specs=pl.BlockSpec((btile, tq, Hp), lambda b, qi, ki: (b, qi, 0)),
        scratch_shapes=[
            pltpu.VMEM((btile, tq, Hp), jnp.bfloat16),   # q tile (bf16)
            pltpu.VMEM((btile, tq, 1), jnp.float32),     # m (running max)
            pltpu.VMEM((btile, tq, 1), jnp.float32),     # l (running denom)
            pltpu.VMEM((btile, tq, Hp), jnp.float32),    # acc (un-normalized)
        ],
    )

    out_padded = pl.pallas_call(
        _flash_attention_head_kernel,
        out_shape=jax.ShapeDtypeStruct((B, S, Hp), x.dtype),
        grid_spec=grid_spec,
        compiler_params=pltpu.CompilerParams(
            dimension_semantics=("parallel", "parallel", "arbitrary"),
            vmem_limit_bytes=vmem_limit,
        ),
    )(x, x, wq_p, bq_p, wkv_p, bkv_p)

    if Hp == H:
        return out_padded
    return out_padded[:, :, :H]


def _reference_forward(x, wq, bq, wk, bk, wv, bv):
    """Pure-JAX f32 reference matching the PyTorch module (eval mode)."""
    H = wq.shape[0]
    S = x.shape[1]
    q = x @ wq.T + bq
    k = x @ wk.T + bk
    v = x @ wv.T + bv
    attn = (q @ jnp.swapaxes(k, -2, -1)) * (H ** -0.5)
    mask = jnp.tril(jnp.ones((S, S), dtype=bool))
    attn = jnp.where(mask, attn, -jnp.inf)
    attn = jax.nn.softmax(attn, axis=-1)
    return attn @ v


if __name__ == "__main__":
    # ModelConfig(embedding_size=32, num_heads=4) -> head_size H = 8
    B, S, E = 2, 8, 32
    H = E // 4

    key = jax.random.PRNGKey(0)
    kx, kwq, kbq, kwk, kbk, kwv, kbv = jax.random.split(key, 7)

    # nn.Linear(E, H): weight (H, E), bias (H), uniform(-1/sqrt(E), 1/sqrt(E))
    bound = 1.0 / math.sqrt(E)

    def init_linear(kw, kb):
        w = jax.random.uniform(kw, (H, E), jnp.float32, -bound, bound)
        b = jax.random.uniform(kb, (H,), jnp.float32, -bound, bound)
        return w, b

    wq, bq = init_linear(kwq, kbq)
    wk, bk = init_linear(kwk, kbk)
    wv, bv = init_linear(kwv, kbv)

    x = jax.random.normal(kx, (B, S, E), jnp.float32)

    out = attention_head_forward(x, wq, bq, wk, bk, wv, bv)
    out = jax.block_until_ready(out)

    ref = _reference_forward(x, wq, bq, wk, bk, wv, bv)
    assert out.shape == (B, S, H), out.shape
    # bf16 MXU operands (f32 accumulation) + approx reciprocal
    # => compare with bf16-level tolerance.
    assert jnp.allclose(out, ref, atol=2e-2, rtol=2e-2), "mismatch vs reference"

    print("KERNEL_OK")
</pallas_src>

<mosaic_0001>
module attributes {stable_mosaic.version = 11 : i64} {
  func.func @_flash_attention_head_kernel(%arg0: i32, %arg1: i32, %arg2: i32, %arg3: memref<1x8x32xf32, #tpu.memory_space<vmem>>, %arg4: memref<1x8x32xf32, #tpu.memory_space<vmem>>, %arg5: memref<32x128xbf16, #tpu.memory_space<vmem>>, %arg6: memref<1x128xf32, #tpu.memory_space<vmem>>, %arg7: memref<32x256xbf16, #tpu.memory_space<vmem>>, %arg8: memref<1x256xf32, #tpu.memory_space<vmem>>, %arg9: memref<1x8x128xf32, #tpu.memory_space<vmem>>, %arg10: memref<1x8x128xbf16, #tpu.memory_space<vmem>>, %arg11: memref<1x8x1xf32, #tpu.memory_space<vmem>>, %arg12: memref<1x8x1xf32, #tpu.memory_space<vmem>>, %arg13: memref<1x8x128xf32, #tpu.memory_space<vmem>>) attributes {dimension_semantics = [#tpu.dimension_semantics<parallel>, #tpu.dimension_semantics<parallel>, #tpu.dimension_semantics<arbitrary>], iteration_bounds = array<i64: 2, 1, 1>, scalar_prefetch = 0 : i64, scratch_operands = 4 : i64, tpu.core_type = #tpu.core_type<tc>, window_params = [{transform_indices = @transform_0, window_bounds = array<i64: 1, 8, 32>}, {transform_indices = @transform_1, window_bounds = array<i64: 1, 8, 32>}, {pipeline_mode = #tpu.pipeline_mode<synchronous>, transform_indices = @transform_2, window_bounds = array<i64: 32, 128>}, {pipeline_mode = #tpu.pipeline_mode<synchronous>, transform_indices = @transform_3, window_bounds = array<i64: 1, 128>}, {pipeline_mode = #tpu.pipeline_mode<synchronous>, transform_indices = @transform_4, window_bounds = array<i64: 32, 256>}, {pipeline_mode = #tpu.pipeline_mode<synchronous>, transform_indices = @transform_5, window_bounds = array<i64: 1, 256>}, {transform_indices = @transform_6, window_bounds = array<i64: 1, 8, 128>}]} {
    %c8_i32 = arith.constant 8 : i32
    %0 = arith.muli %arg1, %c8_i32 : i32
    %c8_i32_0 = arith.constant 8 : i32
    %1 = arith.muli %arg2, %c8_i32_0 : i32
    %c0_i32 = arith.constant 0 : i32
    %2 = arith.cmpi eq, %arg2, %c0_i32 : i32
    %3 = arith.extui %2 : i1 to i32
    %c0_i32_1 = arith.constant 0 : i32
    %4 = arith.cmpi ne, %3, %c0_i32_1 : i32
    scf.if %4 {
      %c0 = arith.constant 0 : index
      %c0_5 = arith.constant 0 : index
      %c0_6 = arith.constant 0 : index
      %12 = vector.load %arg3[%c0, %c0_5, %c0_6] : memref<1x8x32xf32, #tpu.memory_space<vmem>>, vector<1x8x32xf32>
      %13 = arith.truncf %12 : vector<1x8x32xf32> to vector<1x8x32xbf16>
      %c0_7 = arith.constant 0 : index
      %c0_8 = arith.constant 0 : index
      %14 = vector.load %arg5[%c0_7, %c0_8] : memref<32x128xbf16, #tpu.memory_space<vmem>>, vector<32x128xbf16>
      %cst = arith.constant dense<0.000000e+00> : vector<1x8x128xf32>
      %15 = tpu.matmul %13, %14, %cst {dimension_numbers = #tpu.dot_dimension_numbers<[2], [0], [0, 1], [1], [0, 0, 0, 1, 1, 1], [], []>} : vector<1x8x32xbf16>, vector<32x128xbf16>, vector<1x8x128xf32> -> vector<1x8x128xf32>
      %c0_9 = arith.constant 0 : index
      %c0_10 = arith.constant 0 : index
      %16 = vector.load %arg6[%c0_9, %c0_10] : memref<1x128xf32, #tpu.memory_space<vmem>>, vector<1x128xf32>
      %17 = vector.shape_cast %16 : vector<1x128xf32> to vector<1x1x128xf32>
      %18 = vector.broadcast %17 : vector<1x1x128xf32> to vector<1x8x128xf32>
      %19 = arith.addf %15, %18 : vector<1x8x128xf32>
      %20 = arith.truncf %19 : vector<1x8x128xf32> to vector<1x8x128xbf16>
      %c0_11 = arith.constant 0 : index
      %c0_12 = arith.constant 0 : index
      %c0_13 = arith.constant 0 : index
      %21 = vector.load %arg10[%c0_11, %c0_12, %c0_13] : memref<1x8x128xbf16, #tpu.memory_space<vmem>>, vector<1x8x128xbf16>
      tpu.vector_store %arg10[%c0_11, %c0_12, %c0_13], %20 {strides = array<i32>} : memref<1x8x128xbf16, #tpu.memory_space<vmem>>, vector<1x8x128xbf16>,
      %cst_14 = arith.constant 0xFF800000 : f32
      %22 = vector.broadcast %cst_14 : f32 to vector<1x8x1xf32>
      %c0_15 = arith.constant 0 : index
      %c0_16 = arith.constant 0 : index
      %c0_17 = arith.constant 0 : index
      %23 = vector.load %arg11[%c0_15, %c0_16, %c0_17] : memref<1x8x1xf32, #tpu.memory_space<vmem>>, vector<1x8x1xf32>
      tpu.vector_store %arg11[%c0_15, %c0_16, %c0_17], %22 {strides = array<i32>} : memref<1x8x1xf32, #tpu.memory_space<vmem>>, vector<1x8x1xf32>,
      %cst_18 = arith.constant 0.000000e+00 : f32
      %24 = vector.broadcast %cst_18 : f32 to vector<1x8x1xf32>
      %c0_19 = arith.constant 0 : index
      %c0_20 = arith.constant 0 : index
      %c0_21 = arith.constant 0 : index
      %25 = vector.load %arg12[%c0_19, %c0_20, %c0_21] : memref<1x8x1xf32, #tpu.memory_space<vmem>>, vector<1x8x1xf32>
      tpu.vector_store %arg12[%c0_19, %c0_20, %c0_21], %24 {strides = array<i32>} : memref<1x8x1xf32, #tpu.memory_space<vmem>>, vector<1x8x1xf32>,
      %cst_22 = arith.constant 0.000000e+00 : f32
      %26 = vector.broadcast %cst_22 : f32 to vector<1x8x128xf32>
      %c0_23 = arith.constant 0 : index
      %c0_24 = arith.constant 0 : index
      %c0_25 = arith.constant 0 : index
      %27 = vector.load %arg13[%c0_23, %c0_24, %c0_25] : memref<1x8x128xf32, #tpu.memory_space<vmem>>, vector<1x8x128xf32>
      tpu.vector_store %arg13[%c0_23, %c0_24, %c0_25], %26 {strides = array<i32>} : memref<1x8x128xf32, #tpu.memory_space<vmem>>, vector<1x8x128xf32>,
    } else {
    }
    %c7_i32 = arith.constant 7 : i32
    %5 = arith.addi %0, %c7_i32 : i32
    %6 = arith.cmpi sle, %1, %5 : i32
    %7 = arith.extui %6 : i1 to i32
    %c0_i32_2 = arith.constant 0 : i32
    %8 = arith.cmpi ne, %7, %c0_i32_2 : i32
    scf.if %8 {
      %c0 = arith.constant 0 : index
      %c0_5 = arith.constant 0 : index
      %c0_6 = arith.constant 0 : index
      %12 = vector.load %arg4[%c0, %c0_5, %c0_6] : memref<1x8x32xf32, #tpu.memory_space<vmem>>, vector<1x8x32xf32>
      %13 = arith.truncf %12 : vector<1x8x32xf32> to vector<1x8x32xbf16>
      %c0_7 = arith.constant 0 : index
      %c0_8 = arith.constant 0 : index
      %14 = vector.load %arg7[%c0_7, %c0_8] : memref<32x256xbf16, #tpu.memory_space<vmem>>, vector<32x256xbf16>
      %cst = arith.constant dense<0.000000e+00> : vector<1x8x256xf32>
      %15 = tpu.matmul %13, %14, %cst {dimension_numbers = #tpu.dot_dimension_numbers<[2], [0], [0, 1], [1], [0, 0, 0, 1, 1, 1], [], []>} : vector<1x8x32xbf16>, vector<32x256xbf16>, vector<1x8x256xf32> -> vector<1x8x256xf32>
      %c0_9 = arith.constant 0 : index
      %c0_10 = arith.constant 0 : index
      %16 = vector.load %arg8[%c0_9, %c0_10] : memref<1x256xf32, #tpu.memory_space<vmem>>, vector<1x256xf32>
      %17 = vector.shape_cast %16 : vector<1x256xf32> to vector<1x1x256xf32>
      %18 = vector.broadcast %17 : vector<1x1x256xf32> to vector<1x8x256xf32>
      %19 = arith.addf %15, %18 : vector<1x8x256xf32>
      %20 = vector.extract_strided_slice %19 {offsets = [0, 0, 0], sizes = [1, 8, 128], strides = [1, 1, 1]} : vector<1x8x256xf32> to vector<1x8x128xf32>
      %21 = arith.truncf %20 : vector<1x8x128xf32> to vector<1x8x128xbf16>
      %22 = vector.extract_strided_slice %19 {offsets = [0, 0, 128], sizes = [1, 8, 128], strides = [1, 1, 1]} : vector<1x8x256xf32> to vector<1x8x128xf32>
      %23 = arith.truncf %22 : vector<1x8x128xf32> to vector<1x8x128xbf16>
      %c0_11 = arith.constant 0 : index
      %c0_12 = arith.constant 0 : index
      %c0_13 = arith.constant 0 : index
      %24 = vector.load %arg10[%c0_11, %c0_12, %c0_13] : memref<1x8x128xbf16, #tpu.memory_space<vmem>>, vector<1x8x128xbf16>
      %cst_14 = arith.constant dense<0.000000e+00> : vector<1x8x8xf32>
      %25 = tpu.matmul %24, %21, %cst_14 {dimension_numbers = #tpu.dot_dimension_numbers<[2], [2], [1], [1], [0, 0, 0, 1, 1, 1], [0], [0]>} : vector<1x8x128xbf16>, vector<1x8x128xbf16>, vector<1x8x8xf32> -> vector<1x8x8xf32>
      %26 = tpu.iota {dimensions = array<i32: 0>} : vector<8x8xi32>
      %27 = vector.broadcast %0 : i32 to vector<8x8xi32>
      %28 = arith.addi %27, %26 : vector<8x8xi32>
      %29 = tpu.iota {dimensions = array<i32: 1>} : vector<8x8xi32>
      %30 = vector.broadcast %1 : i32 to vector<8x8xi32>
      %31 = arith.addi %30, %29 : vector<8x8xi32>
      %32 = arith.cmpi sle, %31, %28 : vector<8x8xi32>
      %33 = vector.shape_cast %32 : vector<8x8xi1> to vector<1x8x8xi1>
      %cst_15 = arith.constant -1.000000e+30 : f32
      %34 = vector.broadcast %cst_15 : f32 to vector<1x8x8xf32>
      %35 = arith.select %33, %25, %34 : vector<1x8x8xi1>, vector<1x8x8xf32>
      %c0_16 = arith.constant 0 : index
      %c0_17 = arith.constant 0 : index
      %c0_18 = arith.constant 0 : index
      %36 = vector.load %arg11[%c0_16, %c0_17, %c0_18] : memref<1x8x1xf32, #tpu.memory_space<vmem>>, vector<1x8x1xf32>
      %cst_19 = arith.constant dense<0xFF800000> : vector<1x8xf32>
      %37 = vector.multi_reduction <maximumf>, %35, %cst_19 [2] : vector<1x8x8xf32> to vector<1x8xf32>
      %38 = vector.shape_cast %37 : vector<1x8xf32> to vector<1x8x1xf32>
      %39 = arith.maximumf %36, %38 : vector<1x8x1xf32>
      %40 = arith.subf %36, %39 : vector<1x8x1xf32>
      %41 = math.exp %40 : vector<1x8x1xf32>
      %42 = vector.broadcast %39 : vector<1x8x1xf32> to vector<1x8x8xf32>
      %43 = arith.subf %35, %42 : vector<1x8x8xf32>
      %44 = math.exp %43 : vector<1x8x8xf32>
      %c0_20 = arith.constant 0 : index
      %c0_21 = arith.constant 0 : index
      %c0_22 = arith.constant 0 : index
      %45 = vector.load %arg12[%c0_20, %c0_21, %c0_22] : memref<1x8x1xf32, #tpu.memory_space<vmem>>, vector<1x8x1xf32>
      %46 = arith.mulf %41, %45 : vector<1x8x1xf32>
      %cst_23 = arith.constant dense<0.000000e+00> : vector<1x8xf32>
      %47 = vector.multi_reduction <add>, %44, %cst_23 [2] : vector<1x8x8xf32> to vector<1x8xf32>
      %48 = vector.shape_cast %47 : vector<1x8xf32> to vector<1x8x1xf32>
      %49 = arith.addf %46, %48 : vector<1x8x1xf32>
      %c0_24 = arith.constant 0 : index
      %c0_25 = arith.constant 0 : index
      %c0_26 = arith.constant 0 : index
      %50 = vector.load %arg12[%c0_24, %c0_25, %c0_26] : memref<1x8x1xf32, #tpu.memory_space<vmem>>, vector<1x8x1xf32>
      tpu.vector_store %arg12[%c0_24, %c0_25, %c0_26], %49 {strides = array<i32>} : memref<1x8x1xf32, #tpu.memory_space<vmem>>, vector<1x8x1xf32>,
      %51 = arith.truncf %44 : vector<1x8x8xf32> to vector<1x8x8xbf16>
      %cst_27 = arith.constant dense<0.000000e+00> : vector<1x8x128xf32>
      %52 = tpu.matmul %51, %23, %cst_27 {dimension_numbers = #tpu.dot_dimension_numbers<[2], [1], [1], [2], [0, 0, 0, 1, 1, 2], [0], [0]>} : vector<1x8x8xbf16>, vector<1x8x128xbf16>, vector<1x8x128xf32> -> vector<1x8x128xf32>
      %c0_28 = arith.constant 0 : index
      %c0_29 = arith.constant 0 : index
      %c0_30 = arith.constant 0 : index
      %53 = vector.load %arg13[%c0_28, %c0_29, %c0_30] : memref<1x8x128xf32, #tpu.memory_space<vmem>>, vector<1x8x128xf32>
      %54 = vector.broadcast %41 : vector<1x8x1xf32> to vector<1x8x128xf32>
      %55 = arith.mulf %54, %53 : vector<1x8x128xf32>
      %56 = arith.addf %55, %52 : vector<1x8x128xf32>
      %c0_31 = arith.constant 0 : index
      %c0_32 = arith.constant 0 : index
      %c0_33 = arith.constant 0 : index
      %57 = vector.load %arg13[%c0_31, %c0_32, %c0_33] : memref<1x8x128xf32, #tpu.memory_space<vmem>>, vector<1x8x128xf32>
      tpu.vector_store %arg13[%c0_31, %c0_32, %c0_33], %56 {strides = array<i32>} : memref<1x8x128xf32, #tpu.memory_space<vmem>>, vector<1x8x128xf32>,
      %c0_34 = arith.constant 0 : index
      %c0_35 = arith.constant 0 : index
      %c0_36 = arith.constant 0 : index
      %58 = vector.load %arg11[%c0_34, %c0_35, %c0_36] : memref<1x8x1xf32, #tpu.memory_space<vmem>>, vector<1x8x1xf32>
      tpu.vector_store %arg11[%c0_34, %c0_35, %c0_36], %39 {strides = array<i32>} : memref<1x8x1xf32, #tpu.memory_space<vmem>>, vector<1x8x1xf32>,
    } else {
    }
    %c0_i32_3 = arith.constant 0 : i32
    %9 = arith.cmpi eq, %arg2, %c0_i32_3 : i32
    %10 = arith.extui %9 : i1 to i32
    %c0_i32_4 = arith.constant 0 : i32
    %11 = arith.cmpi ne, %10, %c0_i32_4 : i32
    scf.if %11 {
      %c0 = arith.constant 0 : index
      %c0_5 = arith.constant 0 : index
      %c0_6 = arith.constant 0 : index
      %12 = vector.load %arg12[%c0, %c0_5, %c0_6] : memref<1x8x1xf32, #tpu.memory_space<vmem>>, vector<1x8x1xf32>
      %13 = tpu.reciprocal %12 {approx = true} : vector<1x8x1xf32> -> vector<1x8x1xf32>
      %c0_7 = arith.constant 0 : index
      %c0_8 = arith.constant 0 : index
      %c0_9 = arith.constant 0 : index
      %14 = vector.load %arg13[%c0_7, %c0_8, %c0_9] : memref<1x8x128xf32, #tpu.memory_space<vmem>>, vector<1x8x128xf32>
      %15 = vector.broadcast %13 : vector<1x8x1xf32> to vector<1x8x128xf32>
      %16 = arith.mulf %14, %15 : vector<1x8x128xf32>
      %c0_10 = arith.constant 0 : index
      %c0_11 = arith.constant 0 : index
      %c0_12 = arith.constant 0 : index
      %17 = vector.load %arg9[%c0_10, %c0_11, %c0_12] : memref<1x8x128xf32, #tpu.memory_space<vmem>>, vector<1x8x128xf32>
      tpu.vector_store %arg9[%c0_10, %c0_11, %c0_12], %16 {strides = array<i32>} : memref<1x8x128xf32, #tpu.memory_space<vmem>>, vector<1x8x128xf32>,
    } else {
    }
    return
  }
  func.func @transform_0(%arg0: i32, %arg1: i32, %arg2: i32) -> (i32, i32, i32) {
    %c0_i32 = arith.constant 0 : i32
    %c0_i32_0 = arith.constant 0 : i32
    return %arg0, %arg1, %c0_i32 : i32, i32, i32
  }
  func.func @transform_1(%arg0: i32, %arg1: i32, %arg2: i32) -> (i32, i32, i32) {
    %c0_i32 = arith.constant 0 : i32
    %c0_i32_0 = arith.constant 0 : i32
    return %arg0, %arg2, %c0_i32 : i32, i32, i32
  }
  func.func @transform_2(%arg0: i32, %arg1: i32, %arg2: i32) -> (i32, i32) {
    %c0_i32 = arith.constant 0 : i32
    %c0_i32_0 = arith.constant 0 : i32
    %c0_i32_1 = arith.constant 0 : i32
    return %c0_i32, %c0_i32_0 : i32, i32
  }
  func.func @transform_3(%arg0: i32, %arg1: i32, %arg2: i32) -> (i32, i32) {
    %c0_i32 = arith.constant 0 : i32
    %c0_i32_0 = arith.constant 0 : i32
    %c0_i32_1 = arith.constant 0 : i32
    return %c0_i32, %c0_i32_0 : i32, i32
  }
  func.func @transform_4(%arg0: i32, %arg1: i32, %arg2: i32) -> (i32, i32) {
    %c0_i32 = arith.constant 0 : i32
    %c0_i32_0 = arith.constant 0 : i32
    %c0_i32_1 = arith.constant 0 : i32
    return %c0_i32, %c0_i32_0 : i32, i32
  }
  func.func @transform_5(%arg0: i32, %arg1: i32, %arg2: i32) -> (i32, i32) {
    %c0_i32 = arith.constant 0 : i32
    %c0_i32_0 = arith.constant 0 : i32
    %c0_i32_1 = arith.constant 0 : i32
    return %c0_i32, %c0_i32_0 : i32, i32
  }
  func.func @transform_6(%arg0: i32, %arg1: i32, %arg2: i32) -> (i32, i32, i32) {
    %c0_i32 = arith.constant 0 : i32
    %c0_i32_0 = arith.constant 0 : i32
    return %arg0, %arg1, %c0_i32 : i32, i32, i32
  }
}

</mosaic_0001>

<bundles_post_ra>
// kernel: tpu_custom_call.1
= control target key start
LH: loop header
LB: loop body
LE: loop exit
PB: predicated region body
PF: predicated region fallthrough
CT: control target
= control target key end

     0   :  { %s1462_s0 = inlined_call_operand.hbm [shape: f32[2,8,32], index: 0, kind: input, shape index: {}]   ;;  %s1463_s1 = inlined_call_operand.hbm [shape: f32[2,8,32], index: 1, kind: input, shape index: {}]   ;;  %s1464_s2 = inlined_call_operand.hbm [shape: bf16[32,128], index: 2, kind: input, shape index: {}]   ;;  %s1465_s3 = inlined_call_operand.vmem [shape: f32[1,128], index: 3, kind: input, shape index: {}]   ;;  %s1466_s4 = inlined_call_operand.hbm [shape: bf16[32,256], index: 4, kind: input, shape index: {}]   ;;  %s1467_s5 = inlined_call_operand.vmem [shape: f32[1,256], index: 5, kind: input, shape index: {}]   ;;  %s1468_s6 = inlined_call_operand.hbm [shape: f32[2,8,128], index: 6, kind: output, shape index: {}]  }
   0x1   :  { %1470 = sst [smem:[#allocation20_spill]] %s1462_s0 }
   0x2   :  { %1471 = sst [smem:[#allocation21_spill]] %s1463_s1 }
   0x3   :  { %1472 = sst [smem:[#allocation22_spill]] %s1464_s2 }
   0x4   :  { %1473 = sst [smem:[#allocation23_spill]] %s1466_s4 }
   0x5   :  { %11 = vsyncpa [#allocation7], 0 }
   0x6   :  { %13 = vsyncpa [#allocation7 + $0x1], 0 }
   0x7   :  { %14 = vsyncpa [#allocation10], 0 }
   0x8   :  { %16 = vsyncpa [#allocation10 + $0x1], 0 }
   0x9   :  { %17 = vsyncpa [#allocation13], 0 }
   0xa   :  { %18 = vsyncpa [#allocation8], 0 }
   0xb   :  { %20 = vsyncpa [#allocation8 + $0x1], 0  ;;  %s1239_s21 = smov 0   ;;  %s1241_s22 = smov 0  }
   0xc   :  { %s1243_s23 = smov 0   ;;  %s1245_s24 = smov 0  }
   0xd   :  { %s1247_s25 = smov 0   ;;  %s1249_s26 = smov 0  }
   0xe LB: > { %s1270_s27 = sadd.s32 4294967295, %s1189_s26   ;;  %s821_s28 = sadd.s32 4294967294, %s1189_s26   ;;  %s1189_s26 = sphi %s1249_s26, %s26_s26   ;;  %s1185_s25 = sphi %s1247_s25, %s1495_s25   ;;  %s1181_s24 = sphi %s1245_s24, %s1494_s24   ;;  %s1177_s23 = sphi %s1243_s23, %s1493_s23   ;;  %s1173_s22 = sphi %s1241_s22, %s1492_s22   ;;  %s1169_s21 = sphi %s1239_s21, %s1491_s21  }
   0xf   : > { %p67_p0 = scmp.ne.s32.totalorder %s1173_s22, %s1169_s21  ;;  %p1469_p1 = scmp.eq.s32.totalorder %s1270_s27, 0 }
  0x10   : > { %p211_p3 = scmp.eq.s32.totalorder %s821_s28, 1  ;;  %p822_p5 = scmp.ge.s32.totalorder %s1189_s26, 1 }
  0x11   : > { %p1279_p4 = por %p1469_p1, %p67_p0  ;;  %p218_p7 = scmp.lt.s32.totalorder %s1189_s26, 3 }
  0x12   : > { %p1284_p6 = por %p211_p3, %p67_p0  ;;  %s1191_s8 = smov [#allocation11]  }
  0x13   : > { %p1289_p8 = pnand %p822_p5, %p218_p7  ;;  %s230_s9 = sshll.u32 %s1191_s8, 4  ;;  %s231_s9 = int_to_ptr.vmem [resolvable:$true] %s230_s9 }
  0x14   : > { %s1475_s30 = scalar_select %p1284_p6, 1, 0 }
  0x15   : > { %p891_p9 = pneg %p1289_p8  ;;  %s1192_s11 = smov [#allocation12]  }
  0x16   : > { %s246_s12 = sshll.u32 %s1192_s11, 4  ;;  %s1000_s13 = scalar_lea.vmem %s231_s9, 256  ;;  %s247_s12 = int_to_ptr.vmem [resolvable:$true] %s246_s12 }
  0x17   : > { %p1298_p11 = pnand %p891_p9, %p1469_p1  ;;  %p1001_p13 = scmp.ne.s32.totalorder %s231_s9, %s1000_s13 }
  0x18   : > { %p1008_p5 = scmp.lt.s32.totalorder %s231_s9, %s231_s9  ;;  %p1009_p7 = scmp.lt.s32.totalorder %s1000_s13, %s1000_s13 }
  0x19   : > { %p991_p12 = pneg %p1298_p11 }
  0x1a   : > { %p1010_p10 = por %p1009_p7, %p1008_p5 }
  0x1b   : > { %p1003_p0 = pnand %p1001_p13, %p991_p12 }
  0x1d   : > { %p1004_p3 = pneg %p1003_p0 }
  0x1f   : > { %p1011_p9 = pnand %p1010_p10, %p1004_p3 }
  0x21   : > { %1014 = shalt.err (!%p1011_p9)
}
  0x22   : > { %s1193_s14 = smov 64   ;;  %s1194_s15 = smov 4  }
  0x23   : > { %s1478_s2 = sld [smem:[#allocation22_spill]]  ;;  %s1026_s18 = scalar_lea.vmem %s247_s12, 512 }
  0x24   : > { %p1027_p1 = scmp.ne.s32.totalorder %s247_s12, %s1026_s18  ;;  %p1034_p2 = scmp.lt.s32.totalorder %s247_s12, %s247_s12 }
  0x25   : > { %p1035_p6 = scmp.lt.s32.totalorder %s1026_s18, %s1026_s18 }
  0x26   : > { %p1029_p13 = pnand %p1027_p1, %p991_p12 }
  0x27   : > { %p1036_p5 = por %p1035_p6, %p1034_p2 }
  0x28   : > { %p1030_p0 = pneg %p1029_p13 }
  0x29   : > { %894 = dma.hbm_to_vmem [thread:$0]  (!%p1298_p11), %s1478_s2, 256, %s231_s9, [#allocation10], %s1193_s14, %s1193_s14, %s1194_s15  }
  0x2a   : > { %p1037_p10 = pnand %p1036_p5, %p1030_p0 }
  0x2c   : > { %1040 = shalt.err (!%p1037_p10)
}
  0x2d   : > { %s1195_s19 = smov 128   ;;  %s1196_s20 = smov 8  }
  0x2e   : > { %s1479_s4 = sld [smem:[#allocation23_spill]]  ;;  %s45_s9 = sadd.s32 1, %s1185_s25 }
  0x2f   : > { %s54_s11 = sadd.s32 1, %s1177_s23  ;;  %p47_p1 = scmp.ge.s32.totalorder %s45_s9, 2 }
  0x30   : > { %p61_p2 = scmp.ne.s32.totalorder %s1177_s23, %s1173_s22  ;;  %p62_p6 = scmp.eq.s32.totalorder %s1189_s26, 0 }
  0x31   : > { %p911_p12 = scmp.lt.s32.totalorder %s1189_s26, 2  ;;  %s1497_s9 = smov (%p47_p1, %s45_s9), 0 }
  0x32   : > { %p63_p3 = por %p62_p6, %p61_p2  ;;  %p1480_p7 = scmp.eq.s32.totalorder %s1270_s27, 1 }
  0x33   : > { %s49_s10 = ssub.s32 %s1185_s25, %s1497_s9  ;;  %s263_s14 = sand.u32 1, %s1177_s23  }
  0x34   : > { %897 = dma.hbm_to_vmem [thread:$0]  (!%p1298_p11), %s1479_s4, 512, %s247_s12, [#allocation13], %s1195_s19, %s1195_s19, %s1196_s20  }
  0x35   : > { %p1330_p9 = por %p1480_p7, %p61_p2  ;;  %p52_p13 = scmp.eq.s32.totalorder %s49_s10, 0 }
  0x36   : > { %s826_s12 = sshll.u32 %s263_s14, 3  ;;  %s827_s15 = sshll.u32 %s1185_s25, 7 }
  0x37   : > { %s1339_s16 = scalar_select %p52_p13, %s1177_s23, %s54_s11  }
  0x38   : > { %s1482_s0 = sld [smem:[#allocation20_spill]]  ;;  %s267_s20 = scalar_lea.vmem [#allocation6], %s826_s12 }
  0x39   : > { %s275_s28 = sshll.u32 %s267_s20, 4  ;;  %p1346_p11 = pnand %p911_p12, %p63_p3  ;;  %s276_s28 = int_to_ptr.vmem [resolvable:$true] %s275_s28 }
  0x3a   : > { %s1484_s1 = sld [smem:[#allocation21_spill]]  ;;  %s264_s11 = scalar_lea.sflag [#allocation7], %s263_s14 }
  0x3b   : > { %p1043_p0 = pneg %p1346_p11  ;;  %s1054_s17 = scalar_lea.vmem %s276_s28, 128 }
  0x3c   : > { %p1055_p5 = scmp.ne.s32.totalorder %s276_s28, %s1054_s17  ;;  %s1197_s18 = smov [#allocation6]  }
  0x3d   : > { %s1059_s20 = sshll.u32 %s1197_s18, 4  ;;  %s1060_s20 = int_to_ptr.vmem [resolvable:$false] %s1059_s20 }
  0x3e   : > { %s273_s19 = scalar_lea.hbm %s1482_s0, %s827_s15  ;;  %p1057_p10 = pnand %p1055_p5, %p1043_p0 }
  0x3f   : > { %s1061_s0 = scalar_lea.vmem %s1060_s20, 256  ;;  %p1062_p2 = scmp.lt.s32.totalorder %s276_s28, %s1060_s20 }
  0x40   : > { %s1353_s4 = scalar_lea.hbm %s1484_s1, %s827_s15  ;;  %p1058_p1 = pneg %p1057_p10 }
  0x41   : > { %p1063_p6 = scmp.lt.s32.totalorder %s1061_s0, %s1054_s17 }
  0x43   : > { %p1064_p12 = por %p1063_p6, %p1062_p2 }
  0x45   : > { %p1065_p3 = pnand %p1064_p12, %p1058_p1 }
  0x47   : > { %1068 = shalt.err (!%p1065_p3)
}
  0x48   : > { %901 = dma.hbm_to_vmem [thread:$0]  (!%p1346_p11), %s273_s19, 128, %s276_s28, %s264_s11  }
  0x49   : > { %s282_s2 = sand.u32 1, %s1189_s26   ;;  %s286_s14 = scalar_lea.vmem [#allocation9], %s826_s12 }
  0x4a   : > { %s294_s15 = sshll.u32 %s286_s14, 4  ;;  %s283_s10 = scalar_lea.sflag [#allocation10], %s282_s2  ;;  %s295_s15 = int_to_ptr.vmem [resolvable:$true] %s294_s15 }
  0x4b   : > { %s1082_s1 = scalar_lea.vmem %s295_s15, 128  ;;  %s1198_s0 = smov [#allocation9]  }
  0x4c   : > { %p1083_p7 = scmp.ne.s32.totalorder %s295_s15, %s1082_s1  ;;  %s1087_s17 = sshll.u32 %s1198_s0, 4  ;;  %s1088_s17 = int_to_ptr.vmem [resolvable:$false] %s1087_s17 }
  0x4d   : > { %s1089_s18 = scalar_lea.vmem %s1088_s17, 256  ;;  %p1090_p10 = scmp.lt.s32.totalorder %s295_s15, %s1088_s17 }
  0x4e   : > { %p1085_p13 = pnand %p1083_p7, %p1043_p0  ;;  %p1091_p1 = scmp.lt.s32.totalorder %s1089_s18, %s1082_s1 }
  0x50   : > { %p1086_p5 = pneg %p1085_p13  ;;  %p1092_p2 = por %p1091_p1, %p1090_p10 }
  0x52   : > { %p1093_p6 = pnand %p1092_p2, %p1086_p5 }
  0x54   : > { %1096 = shalt.err (!%p1093_p6)
}
  0x55   : > { %904 = dma.hbm_to_vmem [thread:$0]  (!%p1346_p11), %s1353_s4, 128, %s295_s15, %s283_s10  }
  0x56   : > { %303 = sbr.rel (%p1289_p8) target bundleno = 1096 (0x448), region = 44  ;;  %s1372_s12 = sand.u32 (!%p1289_p8), 1, %s1173_s22  }
  0x57   : > { %s1375_s19 = sshll.u32 (!%p1289_p8), %s1372_s12, 3  ;;  %s306_s1 = scalar_lea.sflag (!%p1289_p8), [#allocation7], %s1372_s12 }
  0x58   : > { %s309_s28 = scalar_lea.vmem (!%p1289_p8), [#allocation6], %s1375_s19 }
  0x5b   : > { %1148 = dma.done.wait (%p1279_p4), %s306_s1, 128  }
  0x5c   : > { %1150 = vsyncadd (%p1279_p4), %s306_s1, 4294967168  ;;  %s314_s4 = sand.u32 1, %s1270_s27   ;;  %s318_s8 = scalar_lea.vmem [#allocation9], %s1375_s19 }
  0x5d   : > { %s315_s7 = scalar_lea.sflag [#allocation10], %s314_s4 }
  0x5e   : > { %1152 = dma.done.wait (%p1279_p4), %s315_s7, 128  }
  0x5f   : > { %1154 = vsyncadd (%p1279_p4), %s315_s7, 4294967168  ;;  %p1485_p8 = scmp.eq.s32.totalorder %s1270_s27, 0 }
  0x61   : > { %1156 = dma.done.wait (%p1485_p8), [#allocation10], 256   ;;  %p1486_p11 = pmov %p1485_p8 }
  0x62   : > { %p1487_p0 = pmov %p1485_p8 }
  0x63   : > { %1158 = vsyncadd (%p1486_p11), [#allocation10], 4294967040 }
  0x64   : > { %1160 = dma.done.wait (%p1487_p0), [#allocation13], 512   ;;  %p1488_p12 = pmov %p1487_p0 }
  0x65   : > { %v1199_v0 = vmov 0.0   ;;  %vm1200_vm0 = vmmov 0   ;;  %v1201_v1 = vmov 0   ;;  %v975_v2 = vld [vmem:[#allocation11 + $0x8] sm:$0xff]   ;;  %v979_v5 = vld [vmem:[#allocation11] sm:$0xff]   ;;  %v447_v10 = vld [vmem:[%s318_s8] sm:$0xff]  ;;  %v455_v12 = vlaneseq }
  0x66   : > { %1162 = vsyncadd (%p1488_p12), [#allocation13], 4294966784  ;;  %857 = vmatprep.subr.bf16.mxu0 %v1199_v0  ;;  %861 = vmatprep.mubr.msk.bf16.mxu0 %vm1200_vm0, %v1199_v0  ;;  %v976_v3 = vld [vmem:[#allocation12 + $0x14] ss:$8 sps:$4 sm:$0xff]   ;;  %v978_v4 = vld [vmem:[#allocation12 + $0x10] ss:$8 sps:$4 sm:$0xff]   ;;  %v448_v11 = vpack.c.bf16 %v447_v10, %v447_v10 }
  0x67   : > { %521 = vmatprep.mubr.bf16.mxu1 %v1201_v1  ;;  %973 = vset.pattern.permute.xlu0 %v1201_v1  ;;  %v980_v6 = vld [vmem:[#allocation12 + $0x4] ss:$8 sps:$4 sm:$0xff]   ;;  %v982_v7 = vld [vmem:[#allocation12] ss:$8 sps:$4 sm:$0xff]   ;;  %v367_v8 = vld [vmem:[%s309_s28] sm:$0xff]  ;;  %vm392_vm1 = vcmask 261120  }
  0x68   : > { %974 = vset.pattern.permute.xlu1 %v1201_v1  ;;  %858 = vmatpush3.bf16.msra.mxu0 %v975_v2  ;;  %v368_v9 = vpack.c.bf16 %v367_v8, %v367_v8  ;;  %v456_v13 = vshrl.u32 %v455_v12, 7  ;;  %v453_v15 = vld [vmem:[%s1467_s5] sm:$0x3]  ;;  %vm612_vm2 = vcmask 1043456   ;;  %vm438_vm3 = vcmask 7168   ;;  %s847_s2 = sshll.u32 %s1181_s24, 7 }
  0x69   : > { %501 = vmatprep.subr.bf16.mxu1 %v976_v3  ;;  %859 = vmatprep.subr.bf16.mxu0 %v1199_v0  ;;  %v836_v17 = vld [vmem:[%s1465_s3] ss:$0 sm:$0xff]  ;;  %v1202_v36 = vmov -inf   ;;  %440 = vst.msk [vmem:[#allocation4] sm:$0xff] %vm438_vm3, %v1199_v0  ;;  %v578_v37 = vand.u32 127, %v455_v12  ;;  %vm584_vm5 = vcmask 64512   ;;  %s692_s17 = scalar_lea.hbm %s1468_s6, %s847_s2 }
  0x6a   : > { %502 = vmatpush1.bf16.msra.mxu1 %v978_v4  ;;  %v457_v14 = vsub.s32 0, %v456_v13  ;;  %v461_v16 = vsub.s32 1, %v456_v13  ;;  %439 = vst.msk [vmem:[#allocation3] sm:$0xff] %vm438_vm3, %v1202_v36  ;;  %s359_s14 = scalar_lea.vmem [#allocation14], %s1375_s19  ;;  %s680_s18 = scalar_lea.sflag [#allocation8], %s1372_s12 }
  0x6b   : > { %503 = vmatprep.subr.bf16.mxu1 %v980_v6  ;;  %vm581_vm4 = vcmp.le.s32.totalorder %v578_v37, %v456_v13  ;;  %s694_s15 = sshll.u32 %s359_s14, 4  ;;  %s1203_s28 = smov [#allocation14]   ;;  %s695_s15 = int_to_ptr.vmem [resolvable:$true] %s694_s15 }
  0x6c   : > { %860 = vmatpush3.bf16.msra.mxu0 %v979_v5  ;;  %v458_v18 = vrot.slane %v453_v15, %v457_v14  ;;  %v462_v21 = vrot.slane %v453_v15, %v461_v16  ;;  %s1097_s1 = scalar_lea.vmem %s695_s15, 128  ;;  %s1101_s4 = sshll.u32 %s1203_s28, 4  ;;  %s1102_s4 = int_to_ptr.vmem [resolvable:$false] %s1101_s4 }
  0x6d   : > { %865 = vmatprep.subr.bf16.mxu0 %v1199_v0  ;;  %p1098_p4 = scmp.ne.s32.totalorder %s695_s15, %s1097_s1  ;;  %s1103_s24 = scalar_lea.vmem %s1102_s4, 256 }
  0x6e   : > { %504 = vmatpush1.bf16.msra.mxu1 %v982_v7  ;;  %p1104_p13 = scmp.lt.s32.totalorder %s695_s15, %s1102_s4  ;;  %p1105_p5 = scmp.lt.s32.totalorder %s1103_s24, %s1097_s1 }
  0x6f   : > { %862 = vmatmul.mubr.msk.bf16.vlgmr.msra.gmra.mxu0 %vm392_vm1, %v368_v9  ;;  %871 = vmatprep.subr.bf16.mxu1 %v1199_v0  ;;  %p1099_p3 = pnand %p1098_p4, %p1330_p9 }
  0x70   : > { %867 = vmatprep.mubr.msk.bf16.mxu0 %vm1200_vm0, %v1199_v0  ;;  %v600_v56 = vld [vmem:[#allocation4] sm:$0xff]  ;;  %p1106_p10 = por %p1105_p5, %p1104_p13 }
  0x71   : > { %844 = vmatmul.mubr.msk.bf16.vlgmr.msra.gmra.mxu1 %vm392_vm1, %v448_v11  ;;  %v583_v44 = vld [vmem:[#allocation3] sm:$0xff]  ;;  %p1100_p7 = pneg %p1099_p3 }
  0x72   : > { %873 = vmatprep.mubr.msk.bf16.mxu1 %vm1200_vm0, %v1199_v0 }
  0x73   : > { %p1107_p1 = pnand %p1106_p10, %p1100_p7 }
 0x12f   : > { %v430_v19 = vpop.f32.mrf.mxu0 }
 0x130   : > { %v431_v20 = vadd.f32 %v836_v17, %v430_v19 }
 0x131   : > { %v523_v22 = vpop.f32.mrf.mxu1  ;;  %v863_v23 = vpop.f32.mrf.mxu0 }
 0x132   : > { %v436_v24 = vpack.c.bf16 %v431_v20, %v431_v20  ;;  %v524_v25 = vadd.f32 %v523_v22, %v458_v18 }
 0x133   : > { %v525_v26 = vpop.f32.mrf.mxu1  ;;  %v433_v27 = vpop.f32.mrf.mxu0 }
 0x134   : > { %437 = vst [vmem:[#allocation2] sm:$0xf] %v436_v24  ;;  %v530_v28 = vpack.c.bf16 %v524_v25, %v524_v25  ;;  %v526_v29 = vadd.f32 %v525_v26, %v462_v21 }
 0x135   : > { %v527_v30 = vpop.f32.mrf.mxu1  ;;  %v864_v31 = vpop.f32.mrf.mxu0 }
 0x136   : > { %v531_v32 = vpack.c.bf16 %v526_v29, %v526_v29  ;;  %866 = vmatpush3.bf16.xpose.msra.mxu0 %v530_v28 }
 0x137   : > { %v528_v33 = vpop.f32.mrf.mxu1 }
 0x138   : > { %v614_v34 = vsel %vm612_vm2, %v531_v32, 0 }
 0x139   : > { %872 = vmatpush3.bf16.msra.mxu1 %v614_v34 }
 0x13b   : > { %v532_v35 = vld [vmem:[#allocation2] sm:$0xf] }
 0x13d   : > { %868 = vmatmul.mubr.bf16.vlgmr.msra.gmra.mxu0 %v532_v35 }
 0x1fd   : > { %v567_v38 = vpop.f32.mrf.mxu0 }
 0x1fe   : > { %v582_v39 = vsel %vm581_vm4, %v567_v38, -1e+30 }
 0x1ff   : > { %v869_v40 = vpop.f32.mrf.mxu0  ;;  %v585_v41 = vsel %vm584_vm5, %v582_v39, -inf }
 0x200   : > { %586 = vmax.xlane.f32.xlu0 %v585_v41 }
 0x201   : > { %v570_v42 = vpop.f32.mrf.mxu0 }
 0x203   : > { %v870_v43 = vpop.f32.mrf.mxu0 }
 0x289   : > { %v587_v45 = vpop.xlane.xlu0 %586 }
 0x28a   : > { %v588_v46 = vmax.f32 %v583_v44, %v587_v45 }
 0x28c   : > { %v589_v47 = vsub.f32 %v583_v44, %v588_v46  ;;  %665 = vst.msk [vmem:[#allocation3] sm:$0xff] %vm438_vm3, %v588_v46  ;;  %594 = vperm.xlu0 %973, %v588_v46  }
 0x28e   : > { %v590_v52 = vmul.f32 1.442695, %v589_v47 }
 0x307   : > { %v595_v48 = vpop.permute.xlu0 %594 }
 0x308   : > { %v597_v49 = vsub.f32 %v582_v39, %v595_v48 }
 0x30a   : > { %v598_v50 = vmul.f32 1.442695, %v597_v49 }
 0x30c   : > { %983 = vpow2.f32 %v598_v50 }
 0x30d   : > { %985 = vpow2.f32 %v590_v52 }
 0x319   : > { %v984_v51 = vpop.eup %983 }
 0x31a   : > { %v602_v53 = vsel %vm584_vm5, %v984_v51, 0.0  ;;  %v608_v54 = vpack.c.bf16 %v984_v51, %v984_v51  ;;  %v986_v55 = vpop.eup %985 }
 0x31b   : > { %603 = vadd.xlane.f32.xlu1 %v602_v53  ;;  %v601_v57 = vmul.f32 %v986_v55, %v600_v56 }
 0x31c   : > { %874 = vmatmul.mubr.msk.bf16.vlgmr.msra.gmra.mxu1 %vm584_vm5, %v608_v54 }
 0x32c   : > { %659 = vperm.xlu1 %974, %v986_v55  }
 0x3a4   : > { %v604_v58 = vpop.xlane.xlu1 %603 }
 0x3a5   : > { %v605_v59 = vadd.f32 %v604_v58, %v601_v57 }
 0x3a7   : > { %607 = vst.msk [vmem:[#allocation4] sm:$0xff] %vm438_vm3, %v605_v59 }
 0x3a8   : > { %v660_v2 = vpop.permute.xlu1 %659 }
 0x3a9   : > { %v662_v3 = vmul.f32 0.0, %v660_v2 }
 0x3ae   : > { %v669_v60 = vld [vmem:[#allocation4] sm:$0xff] }
 0x3af   : > { %987 = vrcp.f32 %v669_v60 }
 0x3bc   : > { %v988_v61 = vpop.eup %987 }
 0x3bd   : > { %674 = vperm.xlu1 %974, %v988_v61  }
 0x3dc   : > { %v650_v62 = vpop.f32.mrf.mxu1 }
 0x3dd   : > { %v663_v4 = vadd.f32 %v662_v3, %v650_v62 }
 0x3de   : > { %v875_v63 = vpop.f32.mrf.mxu1 }
 0x3e0   : > { %v653_v0 = vpop.f32.mrf.mxu1 }
 0x3e2   : > { %v876_v1 = vpop.f32.mrf.mxu1 }
 0x438   : > { %v675_v5 = vpop.permute.xlu1 %674 }
 0x439   : > { %v677_v6 = vmul.f32 %v675_v5, %v663_v4 }
 0x43b   : > { %678 = vst [vmem:[%s359_s14] sm:$0xff] %v677_v6 }
 0x43c   : > { %1110 = shalt.err (!%p1107_p1)
}
 0x43d   : > { %s1111_s19 = scalar_lea.hbm %s692_s17, 128  ;;  %s1115_s8 = scalar_lea.hbm %s1468_s6, 256 }
 0x43e   : > { %p1112_p2 = scmp.ne.s32.totalorder %s692_s17, %s1111_s19  ;;  %p1116_p11 = scmp.lt.s32.totalorder %s692_s17, %s1468_s6 }
 0x43f   : > { %p1117_p0 = scmp.lt.s32.totalorder %s1115_s8, %s1111_s19 }
 0x440   : > { %p1113_p6 = pnand %p1112_p2, %p1330_p9 }
 0x441   : > { %p1118_p12 = por %p1117_p0, %p1116_p11 }
 0x442   : > { %p1114_p8 = pneg %p1113_p6 }
 0x444   : > { %p1119_p4 = pnand %p1118_p12, %p1114_p8 }
 0x446   : > { %1122 = shalt.err (!%p1119_p4)
}
 0x447   : > { %889 = dma.vmem_to_hbm [thread:$0]  (%p1330_p9), %s695_s15, 128, %s692_s17, %s680_s18  }
 0x448 PF: > { %s706_s11 = sand.u32 1, %s1169_s21   ;;  %p1489_p3 = scmp.ne.s32.totalorder %s1475_s30, 0 }
 0x449   : > { %p1490_p7 = scmp.ge.s32.totalorder %s1189_s26, 2  ;;  %s707_s20 = scalar_lea.sflag [#allocation8], %s706_s11 }
 0x44b   : > { %p906_p13 = pnand %p1490_p7, %p1489_p3 }
 0x44d   : > { %p907_p5 = pneg %p906_p13 }
 0x44f   : > { %1164 = dma.done.wait (%p907_p5), %s707_s20, 128  }
 0x450   : > { %1166 = vsyncadd (%p907_p5), %s707_s20, 4294967168  ;;  %s26_s26 = sadd.s32 1, %s1189_s26   ;;  %s1491_s21 = smov %s1173_s22 }
 0x451   : > { %p23_p10 = scmp.ge.s32.totalorder %s26_s26, 4   ;;  %s1492_s22 = smov %s1177_s23 }
 0x452   : > { %s1493_s23 = smov %s1339_s16  ;;  %s1494_s24 = smov %s1185_s25 }
 0x453   : > { %s1495_s25 = smov %s1497_s9  ;;  %25 = sbr.rel (!%p23_p10) target bundleno = 14 (0xe), region = 122 }
 0x458   :  { %712 = vsyncpa [#allocation7], 1 }
 0x459   :  { %714 = vsyncpa [#allocation7 + $0x1], 1 }
 0x45a   :  { %715 = vsyncpa [#allocation10], 1 }
 0x45b   :  { %717 = vsyncpa [#allocation10 + $0x1], 1 }
 0x45c   :  { %718 = vsyncpa [#allocation13], 1 }
 0x45d   :  { %719 = vsyncpa [#allocation8], 1 }
 0x45e   :  { %721 = vsyncpa [#allocation8 + $0x1], 1 }

</bundles_post_ra>
